<compile_context>
chip_gen: v5e
topology: v5e:2x2
jax: 0.10.0
libtpu: 0.0.40
codegen_flags: <defaults>
</compile_context>

<pallas_src>
import functools

import jax
import jax.numpy as jnp
from jax.experimental import pallas as pl
from jax.experimental.pallas import tpu as pltpu

LANE = 128       # lane width (last-dim tiling)
SUBLANE = 16     # row granularity (covers f32 (8,) and bf16 (16,) packing)
TB_MAX = 2048    # max batch-tile rows (VMEM-safe on v5e/v6e/v7x)


def _round_up(n, m):
    return (n + m - 1) // m * m


def _cdiv(a, b):
    return -(-a // b)


def _qnet_kernel(x_ref, w1_ref, b1_ref, w2_ref, b2_ref, w3_ref, b3_ref, o_ref):
    """Fused 3-layer MLP on one batch tile.

    x_ref:  f32  [TB, K]          (K = input_size, full extent; cast in-kernel)
    w*_ref: bf16 [*, 128-padded]  (lane-padded, VMEM-resident across the grid)
    b*_ref: f32  [1, 128-padded]
    o_ref:  bf16 [TB, 128]        (lane-dense slab; sliced to no_actions outside)
    """
    # In-kernel f32 -> bf16 cast: VPU work is free in a mem-bound kernel and it
    # avoids a separate XLA cast pass over x in HBM.
    x = x_ref[...].astype(jnp.bfloat16)
    # Layer 1: MXU matmul (bf16 in, f32 acc), bias + ReLU in f32.
    h = jnp.dot(x, w1_ref[...], preferred_element_type=jnp.float32) + b1_ref[...]
    h = jnp.maximum(h, 0.0).astype(jnp.bfloat16)
    # Layer 2
    h = jnp.dot(h, w2_ref[...], preferred_element_type=jnp.float32) + b2_ref[...]
    h = jnp.maximum(h, 0.0).astype(jnp.bfloat16)
    # Layer 3 (no activation); store bf16 to halve the writeback stream.
    y = jnp.dot(h, w3_ref[...], preferred_element_type=jnp.float32) + b3_ref[...]
    o_ref[...] = y.astype(jnp.bfloat16)


def prepare_params(params):
    """Pad weights/biases to lane multiples of 128 and cast weights to bf16.

    Padded rows/columns are zero, so the padded network computes exactly the
    same values in the first `no_actions` output columns.
    """
    w1, b1, w2, b2, w3, b3 = params
    input_size, node_size = w1.shape
    no_actions = w3.shape[1]
    node_pad = _round_up(node_size, LANE)
    act_pad = _round_up(no_actions, LANE)

    def pad_w(w, in_pad, out_pad):
        wp = jnp.zeros((in_pad, out_pad), jnp.bfloat16)
        return wp.at[: w.shape[0], : w.shape[1]].set(w.astype(jnp.bfloat16))

    def pad_b(b, out_pad):
        bp = jnp.zeros((1, out_pad), jnp.float32)
        return bp.at[:, : b.shape[1]].set(b.astype(jnp.float32))

    w1p = pad_w(w1, input_size, node_pad)
    w2p = pad_w(w2, node_pad, node_pad)
    w3p = pad_w(w3, node_pad, act_pad)
    b1p = pad_b(b1, node_pad)
    b2p = pad_b(b2, node_pad)
    b3p = pad_b(b3, act_pad)
    return (w1p, b1p, w2p, b2p, w3p, b3p), no_actions


def _choose_tiling(B):
    """Pick (batch tile rows, padded batch rows).

    - Tiles capped at TB_MAX (fits VMEM on all of v5e/v6e/v7x).
    - Once B >= 2 sublanes, use an even number of >= 2 grid steps so v7x's two
      TensorCores both get work under dimension_semantics=("parallel",)
      (harmless on single-TC v5e/v6e).
    - Tile sized adaptively so batch-pad waste stays below one 16-row
      sublane multiple per tile.
    """
    if B < 2 * SUBLANE:
        tb = _round_up(max(B, 1), SUBLANE)
        return tb, tb
    n_tiles = max(_cdiv(B, TB_MAX), 2)
    n_tiles = _round_up(n_tiles, 2)  # balanced split across v7x's 2 TCs
    tb = _round_up(_cdiv(B, n_tiles), SUBLANE)
    return tb, n_tiles * tb


def _xla_qnet(x, prepared, no_actions):
    """Plain fused-XLA path for tiny inference batches (kernel launch + pad/slice
    round-trip is pure fixed overhead at that size)."""
    w1p, b1p, w2p, b2p, w3p, b3p = prepared
    xb = x.astype(jnp.bfloat16)
    h = jnp.maximum(jnp.dot(xb, w1p, preferred_element_type=jnp.float32) + b1p, 0.0)
    h = jnp.maximum(
        jnp.dot(h.astype(jnp.bfloat16), w2p, preferred_element_type=jnp.float32) + b2p, 0.0)
    y = jnp.dot(h.astype(jnp.bfloat16), w3p, preferred_element_type=jnp.float32) + b3p
    return y[:, :no_actions]


@functools.partial(jax.jit, static_argnames=("no_actions", "min_pallas_batch"))
def combinet_forward(x, prepared, no_actions, min_pallas_batch=0):
    """CombiNet.forward (qnet MLP) as a batch-tiled fused Pallas kernel."""
    B, K = x.shape
    if B < min_pallas_batch:
        return _xla_qnet(x, prepared, no_actions)

    w1p, b1p, w2p, b2p, w3p, b3p = prepared
    N_out = w3p.shape[1]  # lane-padded action dim (128)

    TB, B_pad = _choose_tiling(B)

    # Single pad op (no wrapper-side cast); kernel reads f32 directly.
    if B_pad != B:
        x_p = jnp.zeros((B_pad, K), x.dtype).at[:B].set(x)
    else:
        x_p = x

    grid = (B_pad // TB,)

    out = pl.pallas_call(
        _qnet_kernel,
        out_shape=jax.ShapeDtypeStruct((B_pad, N_out), jnp.bfloat16),
        grid_spec=pltpu.PrefetchScalarGridSpec(
            num_scalar_prefetch=0,
            grid=grid,
            in_specs=[
                # x tile marches over batch rows (f32, full K extent).
                pl.BlockSpec((TB, K), lambda i: (i, 0)),
                # Weights / biases: constant index_map -> stay VMEM-resident.
                pl.BlockSpec(w1p.shape, lambda i: (0, 0)),
                pl.BlockSpec(b1p.shape, lambda i: (0, 0)),
                pl.BlockSpec(w2p.shape, lambda i: (0, 0)),
                pl.BlockSpec(b2p.shape, lambda i: (0, 0)),
                pl.BlockSpec(w3p.shape, lambda i: (0, 0)),
                pl.BlockSpec(b3p.shape, lambda i: (0, 0)),
            ],
            out_specs=pl.BlockSpec((TB, N_out), lambda i: (i, 0)),
        ),
        compiler_params=pltpu.CompilerParams(
            # Batch axis is independent -> lets v7x shard across its 2 TCs;
            # harmless on single-TC v5e/v6e.
            dimension_semantics=("parallel",),
        ),
    )(x_p, w1p, b1p, w2p, b2p, w3p, b3p)

    # Slice the lane-dense slab back to the logical output shape (f32, as in
    # the PyTorch module). The slice+cast touches only (B, no_actions) values.
    return out[:B, :no_actions].astype(jnp.float32)


def init_params(key, input_size, node_size, no_actions):
    """Deterministic init mimicking PyTorch nn.Linear defaults
    (uniform +-1/sqrt(fan_in)); weights stored as [in, out]."""
    def linear(key, fan_in, fan_out):
        kw, kb = jax.random.split(key)
        bound = 1.0 / jnp.sqrt(fan_in)
        w = jax.random.uniform(kw, (fan_in, fan_out), jnp.float32, -bound, bound)
        b = jax.random.uniform(kb, (1, fan_out), jnp.float32, -bound, bound)
        return w, b

    k1, k2, k3 = jax.random.split(key, 3)
    w1, b1 = linear(k1, input_size, node_size)
    w2, b2 = linear(k2, node_size, node_size)
    w3, b3 = linear(k3, node_size, no_actions)
    return (w1, b1, w2, b2, w3, b3)


def reference_forward(x, params, bf16=False):
    """Pure-JAX reference. bf16=True mimics the kernel's bf16-in / f32-acc."""
    w1, b1, w2, b2, w3, b3 = params
    cast = (lambda a: a.astype(jnp.bfloat16)) if bf16 else (lambda a: a)
    dot = lambda a, b: jnp.dot(cast(a), cast(b),
                               preferred_element_type=jnp.float32)
    h = jnp.maximum(dot(x, w1) + b1, 0.0)
    h = jnp.maximum(dot(h, w2) + b2, 0.0)
    return dot(h, w3) + b3


if __name__ == "__main__":
    # Small shapes consistent with the module's forward (x: [batch, input_size]).
    batch, input_size, node_size, no_actions = 8, 64, 32, 8
    # TODO(synk): get_features / forward_all depend on an external
    # `featnet_no_decision.features` backbone that is not defined in this
    # module; only the qnet forward path is implemented here.

    key = jax.random.PRNGKey(0)
    kx, kp, kx2 = jax.random.split(key, 3)
    x = jax.random.normal(kx, (batch, input_size), jnp.float32)
    params = init_params(kp, input_size, node_size, no_actions)
    prepared, n_act = prepare_params(params)

    # --- tiny batch through the Pallas kernel (single grid step) ---
    out = combinet_forward(x, prepared, n_act)  # default: always kernel
    out = jax.block_until_ready(out)
    assert out.shape == (batch, no_actions)
    assert out.dtype == jnp.float32

    ref_bf16 = reference_forward(x, params, bf16=True)
    ref_f32 = reference_forward(x, params, bf16=False)
    # bf16 output store adds ~0.4% relative rounding on top of the bf16 matmuls.
    assert jnp.allclose(out, ref_bf16, atol=2e-2, rtol=2e-2), \
        "mismatch vs bf16 reference"
    assert jnp.allclose(out, ref_f32, atol=5e-2, rtol=5e-2), \
        "mismatch vs f32 reference"

    # --- larger, non-multiple batch: exercises adaptive tiling (2 tiles of 160,
    #     pad 300 -> 320) + the parallel batch axis ---
    x_big = jax.random.normal(kx2, (300, input_size), jnp.float32)
    out_big = jax.block_until_ready(combinet_forward(x_big, prepared, n_act))
    assert out_big.shape == (300, no_actions)
    assert jnp.allclose(out_big, reference_forward(x_big, params, bf16=True),
                        atol=2e-2, rtol=2e-2), "mismatch vs reference (big batch)"

    # --- tiny-batch XLA fallback path (inference-style dispatch) ---
    out_xla = jax.block_until_ready(
        combinet_forward(x, prepared, n_act, min_pallas_batch=64))
    assert out_xla.shape == (batch, no_actions)
    assert jnp.allclose(out_xla, ref_bf16, atol=2e-2, rtol=2e-2), \
        "mismatch vs reference (XLA fallback)"

    print("KERNEL_OK")
</pallas_src>

<mosaic_0001>
module attributes {stable_mosaic.version = 11 : i64} {
  func.func @_qnet_kernel(%arg0: i32, %arg1: memref<16x64xf32, #tpu.memory_space<vmem>>, %arg2: memref<64x128xbf16, #tpu.memory_space<vmem>>, %arg3: memref<1x128xf32, #tpu.memory_space<vmem>>, %arg4: memref<128x128xbf16, #tpu.memory_space<vmem>>, %arg5: memref<1x128xf32, #tpu.memory_space<vmem>>, %arg6: memref<128x128xbf16, #tpu.memory_space<vmem>>, %arg7: memref<1x128xf32, #tpu.memory_space<vmem>>, %arg8: memref<16x128xbf16, #tpu.memory_space<vmem>>) attributes {dimension_semantics = [#tpu.dimension_semantics<parallel>], iteration_bounds = array<i64: 1>, scalar_prefetch = 0 : i64, scratch_operands = 0 : i64, tpu.core_type = #tpu.core_type<tc>, window_params = [{transform_indices = @transform_0, window_bounds = array<i64: 16, 64>}, {pipeline_mode = #tpu.pipeline_mode<synchronous>, transform_indices = @transform_1, window_bounds = array<i64: 64, 128>}, {pipeline_mode = #tpu.pipeline_mode<synchronous>, transform_indices = @transform_2, window_bounds = array<i64: 1, 128>}, {pipeline_mode = #tpu.pipeline_mode<synchronous>, transform_indices = @transform_3, window_bounds = array<i64: 128, 128>}, {pipeline_mode = #tpu.pipeline_mode<synchronous>, transform_indices = @transform_4, window_bounds = array<i64: 1, 128>}, {pipeline_mode = #tpu.pipeline_mode<synchronous>, transform_indices = @transform_5, window_bounds = array<i64: 128, 128>}, {pipeline_mode = #tpu.pipeline_mode<synchronous>, transform_indices = @transform_6, window_bounds = array<i64: 1, 128>}, {transform_indices = @transform_7, window_bounds = array<i64: 16, 128>}]} {
    %c0 = arith.constant 0 : index
    %c0_0 = arith.constant 0 : index
    %0 = vector.load %arg1[%c0, %c0_0] : memref<16x64xf32, #tpu.memory_space<vmem>>, vector<16x64xf32>
    %1 = arith.truncf %0 : vector<16x64xf32> to vector<16x64xbf16>
    %c0_1 = arith.constant 0 : index
    %c0_2 = arith.constant 0 : index
    %2 = vector.load %arg2[%c0_1, %c0_2] : memref<64x128xbf16, #tpu.memory_space<vmem>>, vector<64x128xbf16>
    %cst = arith.constant dense<0.000000e+00> : vector<16x128xf32>
    %3 = tpu.matmul %1, %2, %cst {dimension_numbers = #tpu.dot_dimension_numbers<[1], [0], [0], [1], [0, 0, 1, 1], [], []>} : vector<16x64xbf16>, vector<64x128xbf16>, vector<16x128xf32> -> vector<16x128xf32>
    %c0_3 = arith.constant 0 : index
    %c0_4 = arith.constant 0 : index
    %4 = vector.load %arg3[%c0_3, %c0_4] : memref<1x128xf32, #tpu.memory_space<vmem>>, vector<1x128xf32>
    %5 = vector.broadcast %4 : vector<1x128xf32> to vector<16x128xf32>
    %6 = arith.addf %3, %5 : vector<16x128xf32>
    %cst_5 = arith.constant 0.000000e+00 : f32
    %7 = vector.broadcast %cst_5 : f32 to vector<16x128xf32>
    %8 = arith.maximumf %6, %7 : vector<16x128xf32>
    %9 = arith.truncf %8 : vector<16x128xf32> to vector<16x128xbf16>
    %c0_6 = arith.constant 0 : index
    %c0_7 = arith.constant 0 : index
    %10 = vector.load %arg4[%c0_6, %c0_7] : memref<128x128xbf16, #tpu.memory_space<vmem>>, vector<128x128xbf16>
    %cst_8 = arith.constant dense<0.000000e+00> : vector<16x128xf32>
    %11 = tpu.matmul %9, %10, %cst_8 {dimension_numbers = #tpu.dot_dimension_numbers<[1], [0], [0], [1], [0, 0, 1, 1], [], []>} : vector<16x128xbf16>, vector<128x128xbf16>, vector<16x128xf32> -> vector<16x128xf32>
    %c0_9 = arith.constant 0 : index
    %c0_10 = arith.constant 0 : index
    %12 = vector.load %arg5[%c0_9, %c0_10] : memref<1x128xf32, #tpu.memory_space<vmem>>, vector<1x128xf32>
    %13 = vector.broadcast %12 : vector<1x128xf32> to vector<16x128xf32>
    %14 = arith.addf %11, %13 : vector<16x128xf32>
    %cst_11 = arith.constant 0.000000e+00 : f32
    %15 = vector.broadcast %cst_11 : f32 to vector<16x128xf32>
    %16 = arith.maximumf %14, %15 : vector<16x128xf32>
    %17 = arith.truncf %16 : vector<16x128xf32> to vector<16x128xbf16>
    %c0_12 = arith.constant 0 : index
    %c0_13 = arith.constant 0 : index
    %18 = vector.load %arg6[%c0_12, %c0_13] : memref<128x128xbf16, #tpu.memory_space<vmem>>, vector<128x128xbf16>
    %cst_14 = arith.constant dense<0.000000e+00> : vector<16x128xf32>
    %19 = tpu.matmul %17, %18, %cst_14 {dimension_numbers = #tpu.dot_dimension_numbers<[1], [0], [0], [1], [0, 0, 1, 1], [], []>} : vector<16x128xbf16>, vector<128x128xbf16>, vector<16x128xf32> -> vector<16x128xf32>
    %c0_15 = arith.constant 0 : index
    %c0_16 = arith.constant 0 : index
    %20 = vector.load %arg7[%c0_15, %c0_16] : memref<1x128xf32, #tpu.memory_space<vmem>>, vector<1x128xf32>
    %21 = vector.broadcast %20 : vector<1x128xf32> to vector<16x128xf32>
    %22 = arith.addf %19, %21 : vector<16x128xf32>
    %23 = arith.truncf %22 : vector<16x128xf32> to vector<16x128xbf16>
    %c0_17 = arith.constant 0 : index
    %c0_18 = arith.constant 0 : index
    %24 = vector.load %arg8[%c0_17, %c0_18] : memref<16x128xbf16, #tpu.memory_space<vmem>>, vector<16x128xbf16>
    tpu.vector_store %arg8[%c0_17, %c0_18], %23 {strides = array<i32>} : memref<16x128xbf16, #tpu.memory_space<vmem>>, vector<16x128xbf16>,
    return
  }
  func.func @transform_0(%arg0: i32) -> (i32, i32) {
    %c0_i32 = arith.constant 0 : i32
    %c0_i32_0 = arith.constant 0 : i32
    return %arg0, %c0_i32 : i32, i32
  }
  func.func @transform_1(%arg0: i32) -> (i32, i32) {
    %c0_i32 = arith.constant 0 : i32
    %c0_i32_0 = arith.constant 0 : i32
    %c0_i32_1 = arith.constant 0 : i32
    return %c0_i32, %c0_i32_0 : i32, i32
  }
  func.func @transform_2(%arg0: i32) -> (i32, i32) {
    %c0_i32 = arith.constant 0 : i32
    %c0_i32_0 = arith.constant 0 : i32
    %c0_i32_1 = arith.constant 0 : i32
    return %c0_i32, %c0_i32_0 : i32, i32
  }
  func.func @transform_3(%arg0: i32) -> (i32, i32) {
    %c0_i32 = arith.constant 0 : i32
    %c0_i32_0 = arith.constant 0 : i32
    %c0_i32_1 = arith.constant 0 : i32
    return %c0_i32, %c0_i32_0 : i32, i32
  }
  func.func @transform_4(%arg0: i32) -> (i32, i32) {
    %c0_i32 = arith.constant 0 : i32
    %c0_i32_0 = arith.constant 0 : i32
    %c0_i32_1 = arith.constant 0 : i32
    return %c0_i32, %c0_i32_0 : i32, i32
  }
  func.func @transform_5(%arg0: i32) -> (i32, i32) {
    %c0_i32 = arith.constant 0 : i32
    %c0_i32_0 = arith.constant 0 : i32
    %c0_i32_1 = arith.constant 0 : i32
    return %c0_i32, %c0_i32_0 : i32, i32
  }
  func.func @transform_6(%arg0: i32) -> (i32, i32) {
    %c0_i32 = arith.constant 0 : i32
    %c0_i32_0 = arith.constant 0 : i32
    %c0_i32_1 = arith.constant 0 : i32
    return %c0_i32, %c0_i32_0 : i32, i32
  }
  func.func @transform_7(%arg0: i32) -> (i32, i32) {
    %c0_i32 = arith.constant 0 : i32
    %c0_i32_0 = arith.constant 0 : i32
    return %arg0, %c0_i32 : i32, i32
  }
}

</mosaic_0001>

<bundles_post_ra>
// kernel: combinet_forward.1
= control target key start
LH: loop header
LB: loop body
LE: loop exit
PB: predicated region body
PF: predicated region fallthrough
CT: control target
= control target key end

     0   :  { %12 = vsyncpa [#allocation3], 0  ;;  %s573_s0 = inlined_call_operand.vmem [shape: f32[16,64], index: 0, kind: input, shape index: {}]   ;;  %s574_s1 = inlined_call_operand.hbm [shape: bf16[64,128], index: 1, kind: input, shape index: {}]   ;;  %s575_s2 = inlined_call_operand.vmem [shape: f32[1,128], index: 2, kind: input, shape index: {}]   ;;  %s576_s3 = inlined_call_operand.hbm [shape: bf16[128,128], index: 3, kind: input, shape index: {}]   ;;  %s577_s4 = inlined_call_operand.vmem [shape: f32[1,128], index: 4, kind: input, shape index: {}]   ;;  %s578_s5 = inlined_call_operand.hbm [shape: bf16[128,128], index: 5, kind: input, shape index: {}]   ;;  %s579_s6 = inlined_call_operand.vmem [shape: f32[1,128], index: 6, kind: input, shape index: {}]   ;;  %s580_s7 = inlined_call_operand.vmem [shape: bf16[16,128], index: 7, kind: output, shape index: {}]  }
   0x1   :  { %13 = vsyncpa [#allocation5], 0  ;;  %s35_s26 = sshll.u32 %s576_s3, 4  ;;  %s501_s27 = smov [#allocation4]   ;;  %s36_s26 = int_to_ptr.hbm [resolvable:$true] %s35_s26 }
   0x2   :  { %s37_s28 = sshll.u32 %s501_s27, 4  ;;  %s20_s8 = sshll.u32 %s574_s1, 4  ;;  %s38_s28 = int_to_ptr.vmem [resolvable:$true] %s37_s28  ;;  %s21_s8 = int_to_ptr.hbm [resolvable:$true] %s20_s8 }
   0x3   :  { %s502_s9 = smov 64   ;;  %s503_s10 = smov 4  }
   0x4   :  { %43 = dma.hbm_to_vmem [thread:$0]  %s36_s26, 1024, %s38_s28, [#allocation5], %s502_s9, %s502_s9, %s503_s10  }
   0x5   :  { %s504_s11 = smov [#allocation2]   ;;  %s50_s15 = sshll.u32 %s578_s5, 4  ;;  %s51_s15 = int_to_ptr.hbm [resolvable:$true] %s50_s15 }
   0x6   :  { %s22_s12 = sshll.u32 %s504_s11, 4  ;;  %s505_s3 = smov [#allocation6]   ;;  %s23_s12 = int_to_ptr.vmem [resolvable:$true] %s22_s12 }
   0x7   :  { %28 = dma.hbm_to_vmem [thread:$0]  %s21_s8, 512, %s23_s12, [#allocation3], %s502_s9, %s502_s9, %s503_s10  }
   0x8   :  { %s52_s16 = sshll.u32 %s505_s3, 4  ;;  %s53_s16 = int_to_ptr.vmem [resolvable:$true] %s52_s16 }
   0x9   :  { %58 = dma.hbm_to_vmem [thread:$0]  %s51_s15, 1024, %s53_s16, [#allocation5], %s502_s9, %s502_s9, %s503_s10  }
   0xa   :  { %497 = dma.done.wait [#allocation3], 512  }
   0xb   :  { %498 = vsyncadd [#allocation3], 4294966784 }
   0xc   :  { %499 = dma.done.wait [#allocation5], 2048  }
   0xd   :  { %500 = vsyncadd [#allocation5], 4294965248  ;;  %v395_v0 = vld [vmem:[#allocation2 + $0x18] sm:$0xff]  ;;  %v394_v1 = vld [vmem:[#allocation2 + $0x10] sm:$0xff]  ;;  %vm113_vm0 = vcmask 523264  }
   0xe   :  { %121 = vmatpush.bf16.msra.mxu0 %v395_v0  ;;  %v403_v2 = vld [vmem:[#allocation4 + $0x38] sm:$0xff]  ;;  %v402_v3 = vld [vmem:[#allocation4 + $0x30] sm:$0xff]  ;;  %v393_v4 = vld [vmem:[#allocation2 + $0x8] sm:$0xff] }
   0xf   :  { %202 = vmatpush.bf16.msra.mxu1 %v403_v2  ;;  %v401_v5 = vld [vmem:[#allocation4 + $0x28] sm:$0xff]  ;;  %v392_v6 = vld [vmem:[#allocation2] sm:$0xff]  ;;  %v399_v11 = vld [vmem:[#allocation4 + $0x18] sm:$0xff] }
  0x10   :  { %v74_v7 = vld [vmem:[%s573_s0] sm:$0xff]  ;;  %v75_v8 = vld [vmem:[%s573_s0 + $0x8] sm:$0xff]  ;;  %v398_v12 = vld [vmem:[#allocation4 + $0x10] sm:$0xff] }
  0x11   :  { %v400_v9 = vld [vmem:[#allocation4 + $0x20] sm:$0xff]  ;;  %v76_v10 = vpack.c.bf16 %v75_v8, %v74_v7  ;;  %v397_v13 = vld [vmem:[#allocation4 + $0x8] sm:$0xff]  ;;  %v411_v15 = vld [vmem:[#allocation6 + $0x38] sm:$0xff] }
  0x12   :  { %122 = vmatpush.bf16.msra.mxu0 %v394_v1  ;;  %v396_v14 = vld [vmem:[#allocation4] sm:$0xff]  ;;  %287 = vmatpush.bf16.msra.mxu2 %v411_v15  ;;  %v410_v16 = vld [vmem:[#allocation6 + $0x30] sm:$0xff]  ;;  %v409_v17 = vld [vmem:[#allocation6 + $0x28] sm:$0xff] }
  0x13   :  { %203 = vmatpush.bf16.msra.mxu1 %v402_v3  ;;  %v408_v18 = vld [vmem:[#allocation6 + $0x20] sm:$0xff]  ;;  %v407_v27 = vld [vmem:[#allocation6 + $0x18] sm:$0xff]  ;;  %v406_v28 = vld [vmem:[#allocation6 + $0x10] sm:$0xff] }
  0x14   :  { %v422_v20 = vld [vmem:[%s575_s2] ss:$0 sm:$0xff]  ;;  %v405_v29 = vld [vmem:[#allocation6 + $0x8] sm:$0xff] }
  0x15   :  { %v404_v30 = vld [vmem:[#allocation6] sm:$0xff] }
  0x16   :  { %123 = vmatpush.bf16.msra.mxu0 %v393_v4  ;;  %288 = vmatpush.bf16.msra.mxu2 %v410_v16  ;;  %v423_v32 = vld [vmem:[%s577_s4] ss:$0 sm:$0xff] }
  0x17   :  { %204 = vmatpush.bf16.msra.mxu1 %v401_v5  ;;  %v424_v40 = vld [vmem:[%s579_s6] ss:$0 sm:$0xff] }
  0x1a   :  { %124 = vmatpush.bf16.msra.mxu0 %v392_v6  ;;  %289 = vmatpush.bf16.msra.mxu2 %v409_v17 }
  0x1b   :  { %205 = vmatpush.bf16.msra.mxu1 %v400_v9 }
  0x1d   :  { %327 = vmatmul.msk.bf16.vlgmr.msra.gmra.mxu0 %vm113_vm0, %v76_v10 }
  0x1e   :  { %290 = vmatpush.bf16.msra.mxu2 %v408_v18 }
  0x1f   :  { %206 = vmatpush.bf16.msra.mxu1 %v399_v11 }
  0x22   :  { %291 = vmatpush.bf16.msra.mxu2 %v407_v27 }
  0x23   :  { %207 = vmatpush.bf16.msra.mxu1 %v398_v12 }
  0x26   :  { %292 = vmatpush.bf16.msra.mxu2 %v406_v28 }
  0x27   :  { %208 = vmatpush.bf16.msra.mxu1 %v397_v13 }
  0x2a   :  { %293 = vmatpush.bf16.msra.mxu2 %v405_v29 }
  0x2b   :  { %209 = vmatpush.bf16.msra.mxu1 %v396_v14 }
  0x2e   :  { %294 = vmatpush.bf16.msra.mxu2 %v404_v30 }
  0x9a   :  { %v126_v19 = vpop.f32.mrf.mxu0 }
  0x9b   :  { %v127_v21 = vadd.f32 %v422_v20, %v126_v19 }
  0x9d   :  { %v131_v24 = vmax.f32 %v127_v21, 0.0 }
  0xa2   :  { %v128_v22 = vpop.f32.mrf.mxu0 }
  0xa3   :  { %v129_v23 = vadd.f32 %v422_v20, %v128_v22 }
  0xa5   :  { %v132_v25 = vmax.f32 %v129_v23, 0.0 }
  0xa7   :  { %v133_v26 = vpack.c.bf16 %v132_v25, %v131_v24 }
  0xa9   :  { %210 = vmatmul.bf16.vlgmr.msra.gmra.mxu1 %v133_v26 }
 0x126   :  { %v211_v31 = vpop.f32.mrf.mxu1 }
 0x127   :  { %v212_v33 = vadd.f32 %v423_v32, %v211_v31 }
 0x129   :  { %v216_v36 = vmax.f32 %v212_v33, 0.0 }
 0x12e   :  { %v213_v34 = vpop.f32.mrf.mxu1 }
 0x12f   :  { %v214_v35 = vadd.f32 %v423_v32, %v213_v34 }
 0x131   :  { %v217_v37 = vmax.f32 %v214_v35, 0.0 }
 0x133   :  { %v218_v38 = vpack.c.bf16 %v217_v37, %v216_v36 }
 0x135   :  { %295 = vmatmul.bf16.vlgmr.msra.gmra.mxu2 %v218_v38 }
 0x1b8   :  { %v296_v39 = vpop.f32.mrf.mxu2 }
 0x1b9   :  { %v297_v42 = vadd.f32 %v424_v40, %v296_v39 }
 0x1c0   :  { %v298_v41 = vpop.f32.mrf.mxu2 }
 0x1c1   :  { %v299_v43 = vadd.f32 %v424_v40, %v298_v41 }
 0x1c3   :  { %v415_v44 = vpack.c.bf16 %v299_v43, %v297_v42 }
 0x1c5   :  { %416 = vst [vmem:[%s580_s7] sm:$0xff] %v415_v44  }
 0x1c6   :  { %309 = vsyncpa [#allocation3], 1 }
 0x1c7   :  { %310 = vsyncpa [#allocation5], 1 }

</bundles_post_ra>
